<compile_context>
chip_gen: v7x
topology: tpu7x:2x2x1
jax: 0.10.0
libtpu: 0.0.40
codegen_flags: <defaults>
</compile_context>

<pallas_src>
import math

import jax
import jax.numpy as jnp
from jax.experimental import pallas as pl
from jax.experimental.pallas import tpu as pltpu

_LANE = 128
_SUB = 8


def _round_up(x, m):
    return (x + m - 1) // m * m


def _pad_to(x, target_shape):
    pads = [(0, t - s) for s, t in zip(x.shape, target_shape)]
    if all(p == (0, 0) for p in pads):
        return x
    return jnp.pad(x, pads)


def graph_convolution(text, adj, weight, bias=None, *, block_batch=8,
                      block_rows=256, compute_dtype=jnp.bfloat16):
    """Pallas TPU forward for GraphConvolution.

    text:   (B, N, F_in)
    adj:    (B, N, N)
    weight: (F_in, F_out)
    bias:   (F_out,) or None
    returns (B, N, F_out)
    """
    B, N, F_in = text.shape
    F_out = weight.shape[-1]
    if bias is None:
        bias = jnp.zeros((F_out,), dtype=weight.dtype)

    # ---- TPU-friendly padded shapes (lane = 128, sublane = 8) ----
    bb = max(1, min(block_batch, B))            # batch elements per grid step
    B_p = _round_up(B, bb)
    tm = _round_up(min(block_rows, _round_up(N, _SUB)), _SUB)   # adj row tile
    N_p = _round_up(N, tm)
    F_in_p = _round_up(F_in, _LANE)
    F_out_p = _round_up(F_out, _LANE)

    text_p = _pad_to(text, (B_p, N_p, F_in_p))
    adj_p = _pad_to(adj, (B_p, N_p, N_p))
    w_p = _pad_to(weight, (F_in_p, F_out_p))
    b_p = _pad_to(bias.reshape(1, F_out), (1, F_out_p))

    grid = (B_p // bb, N_p // tm)
    out_dtype = text.dtype

    def kernel(text_ref, adj_ref, w_ref, b_ref, out_ref, hidden_ref):
        r = pl.program_id(1)

        # hidden = text @ weight, computed once per batch tile into a
        # persistent VMEM scratch (row axis is "arbitrary"/sequential).
        @pl.when(r == 0)
        def _():
            t = text_ref[...].reshape(bb * N_p, F_in_p).astype(compute_dtype)
            w = w_ref[...].astype(compute_dtype)
            h = jnp.dot(t, w, preferred_element_type=jnp.float32)
            hidden_ref[...] = h.reshape(bb, N_p, F_out_p).astype(hidden_ref.dtype)

        adj_blk = adj_ref[...]                                  # (bb, tm, N_p) f32
        denom = jnp.sum(adj_blk, axis=2, keepdims=True) + 1.0   # exact f32 row sums
        agg = jnp.einsum(
            "brk,bkf->brf",
            adj_blk.astype(compute_dtype),
            hidden_ref[...],
            preferred_element_type=jnp.float32,
        )                                                       # (bb, tm, F_out_p) f32
        # Divide via reciprocal (EUP slot); epilogue stays in f32.
        out = agg * pl.reciprocal(denom) + b_ref[...]
        out_ref[...] = out.astype(out_ref.dtype)

    # ---- explicit VMEM budget (double-buffered streams + persistent scratch)
    itemsize = jnp.dtype(out_dtype).itemsize
    c_itemsize = jnp.dtype(compute_dtype).itemsize
    vmem_est = (
        2 * bb * N_p * F_in_p * itemsize        # text blocks (double-buffered)
        + 2 * bb * tm * N_p * itemsize          # adj row tiles
        + 2 * bb * tm * F_out_p * itemsize      # output tiles
        + F_in_p * F_out_p * itemsize           # weight (single-buffered)
        + F_out_p * itemsize                    # bias
        + bb * N_p * F_out_p * c_itemsize       # hidden scratch
    )
    vmem_limit = int(min(96 * 2**20, max(32 * 2**20, int(1.5 * vmem_est))))

    cost = pl.CostEstimate(
        flops=2 * B * N * F_in * F_out + 2 * B * N * N * F_out,
        transcendentals=B * N,
        bytes_accessed=(text.size + adj.size + weight.size + bias.size
                        + B * N * F_out) * itemsize,
    )

    out_p = pl.pallas_call(
        kernel,
        out_shape=jax.ShapeDtypeStruct((B_p, N_p, F_out_p), out_dtype),
        grid_spec=pltpu.PrefetchScalarGridSpec(
            num_scalar_prefetch=0,
            grid=grid,
            in_specs=[
                # Full text rows per batch tile; index map constant over the
                # row axis, so it is only DMA'd once per batch tile.
                pl.BlockSpec((bb, N_p, F_in_p), lambda b, r: (b, 0, 0)),
                # Row tile of adj.
                pl.BlockSpec((bb, tm, N_p), lambda b, r: (b, r, 0)),
                # Weight / bias: constant index map -> single buffer.
                pl.BlockSpec((F_in_p, F_out_p), lambda b, r: (0, 0),
                             pipeline_mode=pl.Buffered(1)),
                pl.BlockSpec((1, F_out_p), lambda b, r: (0, 0),
                             pipeline_mode=pl.Buffered(1)),
            ],
            out_specs=pl.BlockSpec((bb, tm, F_out_p), lambda b, r: (b, r, 0)),
            scratch_shapes=[pltpu.VMEM((bb, N_p, F_out_p), compute_dtype)],
        ),
        compiler_params=pltpu.CompilerParams(
            dimension_semantics=("parallel", "arbitrary"),
            vmem_limit_bytes=vmem_limit,
        ),
        cost_estimate=cost,
    )(text_p, adj_p, w_p, b_p)

    return out_p[:B, :N, :F_out]


def reference(text, adj, weight, bias):
    hidden = jnp.matmul(text, weight)
    denom = jnp.sum(adj, axis=2, keepdims=True) + 1.0
    out = jnp.matmul(adj, hidden) / denom
    return out + bias


if __name__ == "__main__":
    B, N, F_in, F_out = 2, 16, 32, 32

    key = jax.random.PRNGKey(0)
    k_text, k_adj, k_w, k_b = jax.random.split(key, 4)

    text = jax.random.normal(k_text, (B, N, F_in), dtype=jnp.float32)
    # Non-negative adjacency (typical normalized adj); any values are fine.
    adj = jax.nn.relu(jax.random.normal(k_adj, (B, N, N), dtype=jnp.float32))

    # Deterministic parameter init (the module leaves params uninitialized;
    # use a uniform init consistent with the declared shapes).
    bound = 1.0 / math.sqrt(F_in)
    weight = jax.random.uniform(k_w, (F_in, F_out), jnp.float32, -bound, bound)
    bias = jax.random.uniform(k_b, (F_out,), jnp.float32, -bound, bound)

    ref = reference(text, adj, weight, bias)

    # Exact path: f32 MXU operands — tight tolerance vs. the reference.
    out_f32 = jax.block_until_ready(
        graph_convolution(text, adj, weight, bias, compute_dtype=jnp.float32))
    assert out_f32.shape == (B, N, F_out)
    assert jnp.allclose(out_f32, ref, atol=1e-4, rtol=1e-4)

    # Fast (default) path: bf16 MXU operands, f32 accumulation/epilogue.
    out_bf16 = jax.block_until_ready(graph_convolution(text, adj, weight, bias))
    assert out_bf16.shape == (B, N, F_out)
    assert jnp.allclose(out_bf16, ref, atol=2e-2, rtol=2e-2)

    print("KERNEL_OK")
</pallas_src>

<mosaic_0001>
module attributes {stable_mosaic.version = 11 : i64} {
  func.func @kernel(%arg0: i32, %arg1: i32, %arg2: memref<2x16x128xf32, #tpu.memory_space<vmem>>, %arg3: memref<2x16x16xf32, #tpu.memory_space<vmem>>, %arg4: memref<128x128xf32, #tpu.memory_space<vmem>>, %arg5: memref<1x128xf32, #tpu.memory_space<vmem>>, %arg6: memref<2x16x128xf32, #tpu.memory_space<vmem>>, %arg7: memref<2x16x128xf32, #tpu.memory_space<vmem>>) attributes {dimension_semantics = [#tpu.dimension_semantics<parallel>, #tpu.dimension_semantics<arbitrary>], iteration_bounds = array<i64: 1, 1>, scalar_prefetch = 0 : i64, scratch_operands = 1 : i64, tpu.core_type = #tpu.core_type<tc>, window_params = [{transform_indices = @transform_0, window_bounds = array<i64: 2, 16, 128>}, {transform_indices = @transform_1, window_bounds = array<i64: 2, 16, 16>}, {pipeline_mode = #tpu.pipeline_mode<synchronous>, transform_indices = @transform_2, window_bounds = array<i64: 128, 128>}, {pipeline_mode = #tpu.pipeline_mode<synchronous>, transform_indices = @transform_3, window_bounds = array<i64: 1, 128>}, {transform_indices = @transform_4, window_bounds = array<i64: 2, 16, 128>}]} {
    %c0_i32 = arith.constant 0 : i32
    %0 = arith.cmpi eq, %arg1, %c0_i32 : i32
    %1 = arith.extui %0 : i1 to i32
    %c0_i32_0 = arith.constant 0 : i32
    %2 = arith.cmpi ne, %1, %c0_i32_0 : i32
    scf.if %2 {
      %c0_13 = arith.constant 0 : index
      %c0_14 = arith.constant 0 : index
      %c0_15 = arith.constant 0 : index
      %18 = vector.load %arg2[%c0_13, %c0_14, %c0_15] : memref<2x16x128xf32, #tpu.memory_space<vmem>>, vector<2x16x128xf32>
      %19 = vector.shape_cast %18 : vector<2x16x128xf32> to vector<32x128xf32>
      %c0_16 = arith.constant 0 : index
      %c0_17 = arith.constant 0 : index
      %20 = vector.load %arg4[%c0_16, %c0_17] : memref<128x128xf32, #tpu.memory_space<vmem>>, vector<128x128xf32>
      %cst_18 = arith.constant dense<0.000000e+00> : vector<32x128xf32>
      %21 = tpu.matmul %19, %20, %cst_18 {dimension_numbers = #tpu.dot_dimension_numbers<[1], [0], [0], [1], [0, 0, 1, 1], [], []>} : vector<32x128xf32>, vector<128x128xf32>, vector<32x128xf32> -> vector<32x128xf32>
      %22 = vector.shape_cast %21 : vector<32x128xf32> to vector<2x16x128xf32>
      %c0_19 = arith.constant 0 : index
      %c0_20 = arith.constant 0 : index
      %c0_21 = arith.constant 0 : index
      %23 = vector.load %arg7[%c0_19, %c0_20, %c0_21] : memref<2x16x128xf32, #tpu.memory_space<vmem>>, vector<2x16x128xf32>
      tpu.vector_store %arg7[%c0_19, %c0_20, %c0_21], %22 {strides = array<i32>} : memref<2x16x128xf32, #tpu.memory_space<vmem>>, vector<2x16x128xf32>,
    } else {
    }
    %c0 = arith.constant 0 : index
    %c0_1 = arith.constant 0 : index
    %c0_2 = arith.constant 0 : index
    %3 = vector.load %arg3[%c0, %c0_1, %c0_2] : memref<2x16x16xf32, #tpu.memory_space<vmem>>, vector<2x16x16xf32>
    %cst = arith.constant dense<0.000000e+00> : vector<2x16xf32>
    %4 = vector.multi_reduction <add>, %3, %cst [2] : vector<2x16x16xf32> to vector<2x16xf32>
    %5 = vector.shape_cast %4 : vector<2x16xf32> to vector<2x16x1xf32>
    %cst_3 = arith.constant 1.000000e+00 : f32
    %6 = vector.broadcast %cst_3 : f32 to vector<2x16x1xf32>
    %7 = arith.addf %5, %6 : vector<2x16x1xf32>
    %c0_4 = arith.constant 0 : index
    %c0_5 = arith.constant 0 : index
    %c0_6 = arith.constant 0 : index
    %8 = vector.load %arg7[%c0_4, %c0_5, %c0_6] : memref<2x16x128xf32, #tpu.memory_space<vmem>>, vector<2x16x128xf32>
    "tpu.trace_start"() <{level = 10 : i32, message = "brk,bkf->brf"}> : () -> ()
    %cst_7 = arith.constant dense<0.000000e+00> : vector<2x16x128xf32>
    %9 = tpu.matmul %3, %8, %cst_7 {dimension_numbers = #tpu.dot_dimension_numbers<[2], [1], [1], [2], [0, 0, 0, 1, 1, 2], [0], [0]>} : vector<2x16x16xf32>, vector<2x16x128xf32>, vector<2x16x128xf32> -> vector<2x16x128xf32>
    "tpu.trace_stop"() : () -> ()
    %10 = tpu.reciprocal %7 : vector<2x16x1xf32> -> vector<2x16x1xf32>
    %11 = vector.broadcast %10 : vector<2x16x1xf32> to vector<2x16x128xf32>
    %12 = arith.mulf %9, %11 : vector<2x16x128xf32>
    %c0_8 = arith.constant 0 : index
    %c0_9 = arith.constant 0 : index
    %13 = vector.load %arg5[%c0_8, %c0_9] : memref<1x128xf32, #tpu.memory_space<vmem>>, vector<1x128xf32>
    %14 = vector.shape_cast %13 : vector<1x128xf32> to vector<1x1x128xf32>
    %15 = vector.broadcast %14 : vector<1x1x128xf32> to vector<2x16x128xf32>
    %16 = arith.addf %12, %15 : vector<2x16x128xf32>
    %c0_10 = arith.constant 0 : index
    %c0_11 = arith.constant 0 : index
    %c0_12 = arith.constant 0 : index
    %17 = vector.load %arg6[%c0_10, %c0_11, %c0_12] : memref<2x16x128xf32, #tpu.memory_space<vmem>>, vector<2x16x128xf32>
    tpu.vector_store %arg6[%c0_10, %c0_11, %c0_12], %16 {strides = array<i32>} : memref<2x16x128xf32, #tpu.memory_space<vmem>>, vector<2x16x128xf32>,
    return
  }
  func.func @transform_0(%arg0: i32, %arg1: i32) -> (i32, i32, i32) {
    %c0_i32 = arith.constant 0 : i32
    %c0_i32_0 = arith.constant 0 : i32
    %c0_i32_1 = arith.constant 0 : i32
    return %arg0, %c0_i32, %c0_i32_0 : i32, i32, i32
  }
  func.func @transform_1(%arg0: i32, %arg1: i32) -> (i32, i32, i32) {
    %c0_i32 = arith.constant 0 : i32
    %c0_i32_0 = arith.constant 0 : i32
    return %arg0, %arg1, %c0_i32 : i32, i32, i32
  }
  func.func @transform_2(%arg0: i32, %arg1: i32) -> (i32, i32) {
    %c0_i32 = arith.constant 0 : i32
    %c0_i32_0 = arith.constant 0 : i32
    %c0_i32_1 = arith.constant 0 : i32
    return %c0_i32, %c0_i32_0 : i32, i32
  }
  func.func @transform_3(%arg0: i32, %arg1: i32) -> (i32, i32) {
    %c0_i32 = arith.constant 0 : i32
    %c0_i32_0 = arith.constant 0 : i32
    %c0_i32_1 = arith.constant 0 : i32
    return %c0_i32, %c0_i32_0 : i32, i32
  }
  func.func @transform_4(%arg0: i32, %arg1: i32) -> (i32, i32, i32) {
    %c0_i32 = arith.constant 0 : i32
    %c0_i32_0 = arith.constant 0 : i32
    return %arg0, %arg1, %c0_i32 : i32, i32, i32
  }
}

</mosaic_0001>

<bundles_post_ra>
// kernel: tpu_custom_call.1
= control target key start
LH: loop header
LB: loop body
LE: loop exit
PB: predicated region body
PF: predicated region fallthrough
CT: control target
= control target key end

     0   :  { %9 = vsyncpa [#allocation4], 0  ;;  %s742_s0 = inlined_call_operand.hbm [shape: f32[2,16,128], index: 0, kind: input, shape index: {}]   ;;  %s743_s1 = inlined_call_operand.hbm [shape: f32[2,16,16], index: 1, kind: input, shape index: {}]   ;;  %s744_s2 = inlined_call_operand.hbm [shape: f32[128,128], index: 2, kind: input, shape index: {}]   ;;  %s745_s3 = inlined_call_operand.vmem [shape: f32[1,128], index: 3, kind: input, shape index: {}]   ;;  %s746_s4 = inlined_call_operand.hbm [shape: f32[2,16,128], index: 4, kind: output, shape index: {}]  }
   0x1   :  { %10 = vsyncpa [#allocation7], 0 }
   0x2   :  { %11 = vsyncpa [#allocation5], 0  ;;  %s633_s15 = smov [#allocation6]   ;;  %s634_s17 = smov [#allocation3]  }
   0x3   :  { %s29_s16 = sshll.u32 %s633_s15, 4  ;;  %s17_s18 = sshll.u32 %s634_s17, 4  ;;  %s30_s16 = int_to_ptr.vmem [resolvable:$true] %s29_s16  ;;  %s664_s18 = int_to_ptr.vmem [resolvable:$true] %s17_s18 }
   0x4   :  { %s539_s21 = scalar_lea.hbm %s743_s1, 512 }
   0x5   :  { %p540_p0 = scmp.ne.s32.totalorder %s743_s1, %s539_s21  ;;  %p543_p1 = scmp.lt.u32.totalorder %s539_s21, %s743_s1 }
   0x7   :  { %p545_p2 = pnand %p543_p1, %p540_p0 }
   0x9   :  { %548 = shalt.err (!%p545_p2)
}
   0xa   :  { %s549_s26 = scalar_lea.vmem %s30_s16, 512  ;;  %p554_p4 = scmp.lt.s32.totalorder %s30_s16, %s30_s16 }
   0xb   :  { %p550_p3 = scmp.ne.s32.totalorder %s30_s16, %s549_s26  ;;  %p555_p5 = scmp.lt.s32.totalorder %s549_s26, %s549_s26 }
   0xd   :  { %p556_p6 = por %p555_p5, %p554_p4 }
   0xf   :  { %p557_p7 = pnand %p556_p6, %p550_p3 }
  0x11   :  { %560 = shalt.err (!%p557_p7)
}
  0x12   :  { %s635_s27 = smov 128   ;;  %s636_s28 = smov 8  }
  0x13   :  { %35 = dma.hbm_to_vmem [thread:$0]  %s743_s1, 512, %s30_s16, [#allocation7], %s635_s27, %s635_s27, %s636_s28  }
  0x14   :  { %s561_s7 = scalar_lea.hbm %s742_s0, 512 }
  0x15   :  { %p562_p8 = scmp.ne.s32.totalorder %s742_s0, %s561_s7  ;;  %p565_p9 = scmp.lt.u32.totalorder %s561_s7, %s742_s0 }
  0x17   :  { %p567_p10 = pnand %p565_p9, %p562_p8 }
  0x19   :  { %570 = shalt.err (!%p567_p10)
}
  0x1a   :  { %s571_s12 = scalar_lea.vmem %s664_s18, 512  ;;  %p576_p12 = scmp.lt.s32.totalorder %s664_s18, %s664_s18 }
  0x1b   :  { %p572_p11 = scmp.ne.s32.totalorder %s664_s18, %s571_s12  ;;  %p577_p13 = scmp.lt.s32.totalorder %s571_s12, %s571_s12 }
  0x1d   :  { %p578_p0 = por %p577_p13, %p576_p12 }
  0x1f   :  { %p579_p1 = pnand %p578_p0, %p572_p11 }
  0x21   :  { %582 = shalt.err (!%p579_p1)
}
  0x22   :  { %23 = dma.hbm_to_vmem [thread:$0]  %s742_s0, 512, %s664_s18, [#allocation4], %s635_s27, %s635_s27, %s636_s28  }
  0x23   :  { %s637_s14 = smov [#allocation8]   ;;  %s583_s19 = scalar_lea.hbm %s744_s2, 2048 }
  0x24   :  { %s41_s15 = sshll.u32 %s637_s14, 4  ;;  %p584_p2 = scmp.ne.s32.totalorder %s744_s2, %s583_s19  ;;  %s42_s15 = int_to_ptr.vmem [resolvable:$true] %s41_s15 }
  0x25   :  { %p587_p3 = scmp.lt.u32.totalorder %s583_s19, %s744_s2 }
  0x27   :  { %p589_p4 = pnand %p587_p3, %p584_p2 }
  0x29   :  { %592 = shalt.err (!%p589_p4)
}
  0x2a   :  { %s593_s24 = scalar_lea.vmem %s42_s15, 2048  ;;  %p598_p6 = scmp.lt.s32.totalorder %s42_s15, %s42_s15 }
  0x2b   :  { %p594_p5 = scmp.ne.s32.totalorder %s42_s15, %s593_s24  ;;  %p599_p7 = scmp.lt.s32.totalorder %s593_s24, %s593_s24 }
  0x2d   :  { %p600_p8 = por %p599_p7, %p598_p6 }
  0x2f   :  { %p601_p9 = pnand %p600_p8, %p594_p5 }
  0x31   :  { %604 = shalt.err (!%p601_p9)
}
  0x32   :  { %47 = dma.hbm_to_vmem [thread:$0]  %s744_s2, 2048, %s42_s15, [#allocation7], %s635_s27, %s635_s27, %s636_s28  }
  0x33   :  { %627 = dma.done.wait [#allocation4], 512  }
  0x34   :  { %628 = vsyncadd [#allocation4], 4294966784 }
  0x35   :  { %629 = dma.done.wait [#allocation7], 2560  }
  0x36   :  { %630 = vsyncadd [#allocation7], 4294964736  ;;  %v67_v0 = vld [vmem:[#allocation8] sm:$0xff]  ;;  %v68_v1 = vld [vmem:[#allocation8 + $0x8] sm:$0xff]  ;;  %vm176_vm0 = vcmask 130048   ;;  %s638_s26 = smov [#allocation9]  }
  0x37   :  { %v69_v2 = vld [vmem:[#allocation8 + $0x10] sm:$0xff]  ;;  %v485_v3 = vpack.c.bf16 %v68_v1, %v67_v0  ;;  %v70_v4 = vld [vmem:[#allocation8 + $0x18] sm:$0xff]  ;;  %v71_v6 = vld [vmem:[#allocation8 + $0x20] sm:$0xff]  ;;  %s387_s29 = sshll.u32 %s638_s26, 4  ;;  %s388_s29 = int_to_ptr.vmem [resolvable:$true] %s387_s29 }
  0x38   :  { %v489_v5 = vpack.c.bf16 %v70_v4, %v69_v2  ;;  %v72_v7 = vld [vmem:[#allocation8 + $0x28] sm:$0xff]  ;;  %v63_v9 = vld [vmem:[#allocation3] sm:$0xff]  ;;  %v73_v10 = vld [vmem:[#allocation8 + $0x30] sm:$0xff]  ;;  %p610_p11 = scmp.lt.s32.totalorder %s388_s29, %s388_s29 }
  0x39   :  { %486 = vmatprep.subr.bf16.mxu0 %v485_v3  ;;  %v493_v8 = vpack.c.bf16 %v72_v7, %v71_v6  ;;  %v74_v11 = vld [vmem:[#allocation8 + $0x38] sm:$0xff]  ;;  %465 = vmatprep.mubr.f32.mxu0 %v63_v9  ;;  %v75_v13 = vld [vmem:[#allocation8 + $0x40] sm:$0xff]  ;;  %v76_v14 = vld [vmem:[#allocation8 + $0x48] sm:$0xff] }
  0x3a   :  { %488 = vmatpush3.bf16.msra.mxu0 %v485_v3  ;;  %v497_v12 = vpack.c.bf16 %v74_v11, %v73_v10  ;;  %v501_v15 = vpack.c.bf16 %v76_v14, %v75_v13  ;;  %v77_v16 = vld [vmem:[#allocation8 + $0x50] sm:$0xff]  ;;  %v78_v17 = vld [vmem:[#allocation8 + $0x58] sm:$0xff]  ;;  %v79_v19 = vld [vmem:[#allocation8 + $0x60] sm:$0xff] }
  0x3b   :  { %490 = vmatprep.subr.bf16.mxu0 %v489_v5  ;;  %v505_v18 = vpack.c.bf16 %v78_v17, %v77_v16  ;;  %v80_v20 = vld [vmem:[#allocation8 + $0x68] sm:$0xff]  ;;  %v81_v22 = vld [vmem:[#allocation8 + $0x70] sm:$0xff]  ;;  %v82_v23 = vld [vmem:[#allocation8 + $0x78] sm:$0xff] }
  0x3c   :  { %v509_v21 = vpack.c.bf16 %v80_v20, %v79_v19  ;;  %v513_v24 = vpack.c.bf16 %v82_v23, %v81_v22  ;;  %v64_v25 = vld [vmem:[#allocation3 + $0x8] sm:$0xff]  ;;  %v65_v26 = vld [vmem:[#allocation3 + $0x10] sm:$0xff]  ;;  %v66_v27 = vld [vmem:[#allocation3 + $0x18] sm:$0xff] }
  0x3d   :  { %v172_v28 = vld [vmem:[#allocation6] sm:$0xff]  ;;  %v174_v29 = vld [vmem:[#allocation6 + $0x10] sm:$0xff]  ;;  %v173_v32 = vld [vmem:[#allocation6 + $0x8] sm:$0xff] }
  0x3e   :  { %492 = vmatpush3.bf16.msra.mxu0 %v489_v5  ;;  %475 = vmatprep.mubr.msk.f32.mxu1 %vm176_vm0, %v172_v28  ;;  %v177_v30 = vsel %vm176_vm0, %v172_v28, 0.0  ;;  %v183_v31 = vsel %vm176_vm0, %v174_v29, 0.0  ;;  %v175_v33 = vld [vmem:[#allocation6 + $0x18] sm:$0xff]  ;;  %v180_v34 = vsel %vm176_vm0, %v173_v32, 0.0  ;;  %v404_v53 = vld [vmem:[%s745_s3] ss:$0 sm:$0xff] }
  0x3f   :  { %494 = vmatprep.subr.bf16.mxu0 %v493_v8  ;;  %178 = vadd.xlane.f32.xlu0 %v177_v30  ;;  %v186_v35 = vsel %vm176_vm0, %v175_v33, 0.0  ;;  %s605_s3 = scalar_lea.vmem %s388_s29, 512 }
  0x40   :  { %184 = vadd.xlane.f32.xlu1 %v183_v31  ;;  %p606_p10 = scmp.ne.s32.totalorder %s388_s29, %s605_s3  ;;  %p611_p12 = scmp.lt.s32.totalorder %s605_s3, %s605_s3 }
  0x42   :  { %496 = vmatpush3.bf16.msra.mxu0 %v493_v8  ;;  %p612_p13 = por %p611_p12, %p610_p11 }
  0x43   :  { %498 = vmatprep.subr.bf16.mxu0 %v497_v12  ;;  %181 = vadd.xlane.f32.xlu0 %v180_v34 }
  0x44   :  { %187 = vadd.xlane.f32.xlu1 %v186_v35  ;;  %p613_p0 = pnand %p612_p13, %p606_p10 }
  0x46   :  { %500 = vmatpush3.bf16.msra.mxu0 %v497_v12 }
  0x47   :  { %502 = vmatprep.subr.bf16.mxu0 %v501_v15 }
  0x4a   :  { %504 = vmatpush3.bf16.msra.mxu0 %v501_v15 }
  0x4b   :  { %506 = vmatprep.subr.bf16.mxu0 %v505_v18 }
  0x4e   :  { %508 = vmatpush3.bf16.msra.mxu0 %v505_v18 }
  0x4f   :  { %510 = vmatprep.subr.bf16.mxu0 %v509_v21 }
  0x52   :  { %512 = vmatpush3.bf16.msra.mxu0 %v509_v21 }
  0x53   :  { %514 = vmatprep.subr.bf16.mxu0 %v513_v24 }
  0x56   :  { %516 = vmatpush3.bf16.msra.mxu0 %v513_v24 }
  0x59   :  { %466 = vmatmul.mubr.f32.vlgmr.msra.gmra.mrb[0].mxu0 %v64_v25 }
  0x5a   :  { %468 = vmatprep.mubr.f32.mxu0 %v65_v26 }
  0x5d   :  { %469 = vmatmul.mubr.f32.gmra.mrb[2].mxu0 %v66_v27 }
  0xcc   :  { %v179_v42 = vpop.xlane.xlu0 %178 }
  0xcd   :  { %v185_v43 = vpop.xlane.xlu1 %184  ;;  %v189_v46 = vadd.f32 1.0, %v179_v42 }
  0xce   :  { %v191_v49 = vadd.f32 1.0, %v185_v43 }
  0xd0   :  { %v182_v44 = vpop.xlane.xlu0 %181 }
  0xd1   :  { %v190_v45 = vadd.f32 1.0, %v182_v44  ;;  %v188_v47 = vpop.xlane.xlu1 %187 }
  0xd2   :  { %v192_v48 = vadd.f32 1.0, %v188_v47 }
  0xd3   :  { %531 = vrcp.f32 %v190_v45 }
  0xd4   :  { %533 = vrcp.f32 %v189_v46 }
  0xd5   :  { %535 = vrcp.f32 %v192_v48 }
  0xd6   :  { %537 = vrcp.f32 %v191_v49 }
  0xdd   :  { %v532_v50 = vpop.eup %531 }
  0xde   :  { %v534_v51 = vpop.eup %533 }
  0xdf   :  { %v536_v56 = vpop.eup %535 }
  0xe0   :  { %v538_v61 = vpop.eup %537 }
 0x12c   :  { %v467_v36 = vpop.f32.mrb[0].mxu0 }
 0x12d   :  { %v149_v37 = vpop.f32.mrb[1].mxu0 }
 0x12e   :  { %v517_v38 = vpack.c.bf16 %v467_v36, %v149_v37 }
 0x130   :  { %v470_v39 = vpop.f32.mrb[2].mxu0  ;;  %518 = vmatprep.subr.bf16.mxu1 %v517_v38 }
 0x131   :  { %v159_v40 = vpop.f32.mrb[3].mxu0  ;;  %520 = vmatpush3.bf16.msra.mxu1 %v517_v38 }
 0x132   :  { %v521_v41 = vpack.c.bf16 %v470_v39, %v159_v40 }
 0x134   :  { %476 = vmatmul.mubr.msk.f32.vlgmr.msra.gmra.mrb[0].mxu1 %vm176_vm0, %v173_v32  ;;  %522 = vmatprep.subr.bf16.mxu1 %v521_v41 }
 0x135   :  { %524 = vmatpush3.bf16.msra.mxu1 %v521_v41  ;;  %482 = vmatprep.mubr.msk.f32.mxu1 %vm176_vm0, %v174_v29 }
 0x138   :  { %483 = vmatmul.mubr.msk.f32.vlgmr.msra.gmra.mrb[2].mxu1 %vm176_vm0, %v175_v33 }
 0x207   :  { %v477_v52 = vpop.f32.mrb[0].mxu1 }
 0x208   :  { %v364_v54 = vmul.f32 %v532_v50, %v477_v52  ;;  %v269_v55 = vpop.f32.mrb[1].mxu1 }
 0x209   :  { %v363_v57 = vmul.f32 %v534_v51, %v269_v55 }
 0x20a   :  { %v375_v58 = vadd.f32 %v404_v53, %v364_v54 }
 0x20b   :  { %v374_v59 = vadd.f32 %v404_v53, %v363_v57  ;;  %v484_v60 = vpop.f32.mrb[2].mxu1 }
 0x20c   :  { %379 = vst [vmem:[#allocation9 + $0x8] sm:$0xff] %v375_v58  ;;  %v366_v62 = vmul.f32 %v536_v56, %v484_v60  ;;  %v350_v63 = vpop.f32.mrb[3].mxu1 }
 0x20d   :  { %378 = vst [vmem:[#allocation9] sm:$0xff] %v374_v59  ;;  %v365_v0 = vmul.f32 %v538_v61, %v350_v63 }
 0x20e   :  { %v377_v1 = vadd.f32 %v404_v53, %v366_v62 }
 0x20f   :  { %v376_v2 = vadd.f32 %v404_v53, %v365_v0 }
 0x210   :  { %381 = vst [vmem:[#allocation9 + $0x18] sm:$0xff] %v377_v1 }
 0x211   :  { %380 = vst [vmem:[#allocation9 + $0x10] sm:$0xff] %v376_v2 }
 0x212   :  { %616 = shalt.err (!%p613_p0)
}
 0x213   :  { %s617_s6 = scalar_lea.hbm %s746_s4, 512 }
 0x214   :  { %p618_p1 = scmp.ne.s32.totalorder %s746_s4, %s617_s6  ;;  %p621_p2 = scmp.lt.u32.totalorder %s617_s6, %s746_s4 }
 0x216   :  { %p623_p3 = pnand %p621_p2, %p618_p1 }
 0x218   :  { %626 = shalt.err (!%p623_p3)
}
 0x219   :  { %393 = dma.vmem_to_hbm [thread:$0]  %s388_s29, 512, %s746_s4, [#allocation5], %s635_s27, %s635_s27, %s636_s28  }
 0x21a   :  { %631 = dma.done.wait [#allocation5], 512  }
 0x21b   :  { %632 = vsyncadd [#allocation5], 4294966784 }
 0x21c   :  { %397 = vsyncpa [#allocation4], 1 }
 0x21d   :  { %398 = vsyncpa [#allocation7], 1 }
 0x21e   :  { %399 = vsyncpa [#allocation5], 1 }

</bundles_post_ra>
